<compile_context>
chip_gen: v7x
topology: tpu7x:2x2x1
jax: 0.10.0
libtpu: 0.0.40
codegen_flags: <defaults>
</compile_context>

<pallas_src>
import jax
import jax.numpy as jnp
from jax.experimental import pallas as pl
from jax.experimental.pallas import tpu as pltpu

_LANES = 512          # lane width per row (multiple of 128)
_ROWS_PER_TILE = 256  # sublane rows per tile (multiple of 8)


def scalar_encoder_kernel(x_ref, o_ref):
    # Elementwise cast to float32 (the only compute in ScalarEncoder.forward).
    o_ref[...] = x_ref[...].astype(jnp.float32)


def scalar_encoder(x: jax.Array) -> jax.Array:
    """Pallas implementation of ScalarEncoder.forward.

    Args:
      x: 1-D array of shape (B,), any numeric dtype.
    Returns:
      float32 array of shape (B, 1).
    """
    assert x.ndim == 1, "ScalarEncoder expects a 1-D batch of scalars"
    B = x.shape[0]

    # Pad B so the slab has rows % 8 == 0, and (for large B) so every tile is
    # full -> no masked tail tiles.
    small_chunk = 8 * _LANES                      # 4096 elems: one minimal tile
    full_chunk = _ROWS_PER_TILE * _LANES          # elems per full (256, 512) tile
    if B <= full_chunk:
        Bp = pl.cdiv(B, small_chunk) * small_chunk
        rows = Bp // _LANES
        tm = rows                                 # single tile, sized to data
    else:
        Bp = pl.cdiv(B, full_chunk) * full_chunk
        rows = Bp // _LANES
        tm = _ROWS_PER_TILE

    x_pad = jnp.pad(x, (0, Bp - B)) if Bp != B else x
    slab = x_pad.reshape(rows, _LANES)            # lane-dense (8k, 128m) layout

    grid = (rows // tm,)
    out_slab = pl.pallas_call(
        scalar_encoder_kernel,
        out_shape=jax.ShapeDtypeStruct((rows, _LANES), jnp.float32),
        grid=grid,
        in_specs=[pl.BlockSpec((tm, _LANES), lambda i: (i, 0))],
        out_specs=pl.BlockSpec((tm, _LANES), lambda i: (i, 0)),
        compiler_params=pltpu.CompilerParams(
            dimension_semantics=("parallel",),    # both TCs stream on v7x
            vmem_limit_bytes=16 * 1024 * 1024,    # conservative for v7x's 64 MiB
        ),
    )(slab)

    # Glue: drop padding and present as (B, 1), i.e. torch.unsqueeze(x, 1).
    return out_slab.reshape(Bp)[:B].reshape(B, 1)


if __name__ == "__main__":
    key = jax.random.PRNGKey(0)
    B = 8
    # Integer input to exercise the in-kernel float32 cast.
    x = jax.random.randint(key, (B,), minval=-50, maxval=50, dtype=jnp.int32)

    out = scalar_encoder(x)
    out = jax.block_until_ready(out)

    # Correctness check against the reference semantics.
    ref = x.astype(jnp.float32).reshape(B, 1)
    assert out.shape == (B, 1), out.shape
    assert out.dtype == jnp.float32, out.dtype
    assert bool(jnp.array_equal(out, ref)), "mismatch vs reference"

    print("KERNEL_OK")
</pallas_src>

<mosaic_0001>
module attributes {stable_mosaic.version = 11 : i64} {
  func.func @scalar_encoder_kernel(%arg0: i32, %arg1: memref<8x512xi32, #tpu.memory_space<vmem>>, %arg2: memref<8x512xf32, #tpu.memory_space<vmem>>) attributes {dimension_semantics = [#tpu.dimension_semantics<parallel>], iteration_bounds = array<i64: 1>, scalar_prefetch = 0 : i64, scratch_operands = 0 : i64, tpu.core_type = #tpu.core_type<tc>, window_params = [{transform_indices = @transform_0, window_bounds = array<i64: 8, 512>}, {transform_indices = @transform_1, window_bounds = array<i64: 8, 512>}]} {
    %c0 = arith.constant 0 : index
    %c0_0 = arith.constant 0 : index
    %0 = vector.load %arg1[%c0, %c0_0] : memref<8x512xi32, #tpu.memory_space<vmem>>, vector<8x512xi32>
    %1 = arith.sitofp %0 : vector<8x512xi32> to vector<8x512xf32>
    %c0_1 = arith.constant 0 : index
    %c0_2 = arith.constant 0 : index
    %2 = vector.load %arg2[%c0_1, %c0_2] : memref<8x512xf32, #tpu.memory_space<vmem>>, vector<8x512xf32>
    tpu.vector_store %arg2[%c0_1, %c0_2], %1 {strides = array<i32>} : memref<8x512xf32, #tpu.memory_space<vmem>>, vector<8x512xf32>,
    return
  }
  func.func @transform_0(%arg0: i32) -> (i32, i32) {
    %c0_i32 = arith.constant 0 : i32
    %c0_i32_0 = arith.constant 0 : i32
    return %arg0, %c0_i32 : i32, i32
  }
  func.func @transform_1(%arg0: i32) -> (i32, i32) {
    %c0_i32 = arith.constant 0 : i32
    %c0_i32_0 = arith.constant 0 : i32
    return %arg0, %c0_i32 : i32, i32
  }
}

</mosaic_0001>

<bundles_post_ra>
// kernel: tpu_custom_call.1
= control target key start
LH: loop header
LB: loop body
LE: loop exit
PB: predicated region body
PF: predicated region fallthrough
CT: control target
= control target key end

     0   :  { %6 = vsyncpa [#allocation3], 0  ;;  %s134_s0 = inlined_call_operand.hbm [shape: s32[8,512], index: 0, kind: input, shape index: {}]   ;;  %s135_s1 = inlined_call_operand.hbm [shape: f32[8,512], index: 1, kind: output, shape index: {}]  }
   0x1   :  { %7 = vsyncpa [#allocation4], 0  ;;  %s98_s6 = smov [#allocation2]   ;;  %s50_s10 = scalar_lea.hbm %s134_s0, 512 }
   0x2   :  { %s14_s7 = sshll.u32 %s98_s6, 4  ;;  %p51_p0 = scmp.ne.s32.totalorder %s134_s0, %s50_s10  ;;  %s15_s7 = int_to_ptr.vmem [resolvable:$true] %s14_s7 }
   0x3   :  { %p54_p1 = scmp.lt.u32.totalorder %s50_s10, %s134_s0 }
   0x5   :  { %p56_p2 = pnand %p54_p1, %p51_p0 }
   0x7   :  { %59 = shalt.err (!%p56_p2)
}
   0x8   :  { %s60_s15 = scalar_lea.vmem %s15_s7, 512  ;;  %p65_p4 = scmp.lt.s32.totalorder %s15_s7, %s15_s7 }
   0x9   :  { %p61_p3 = scmp.ne.s32.totalorder %s15_s7, %s60_s15  ;;  %p66_p5 = scmp.lt.s32.totalorder %s60_s15, %s60_s15 }
   0xb   :  { %p67_p6 = por %p66_p5, %p65_p4 }
   0xd   :  { %p68_p7 = pnand %p67_p6, %p61_p3 }
   0xf   :  { %71 = shalt.err (!%p68_p7)
}
  0x10   :  { %17 = dma.hbm_to_vmem [thread:$0]  %s134_s0, 512, %s15_s7, [#allocation3]  }
  0x11   :  { %94 = dma.done.wait [#allocation3], 512  }
  0x12   :  { %95 = vsyncadd [#allocation3], 4294966784  ;;  %s99_s18 = smov [#allocation5]   ;;  %v21_v0 = vld [vmem:[#allocation2] sm:$0xff]  ;;  %v22_v1 = vld [vmem:[#allocation2 + $0x8] sm:$0xff] }
  0x13   :  { %s39_s19 = sshll.u32 %s99_s18, 4  ;;  %v23_v2 = vld [vmem:[#allocation2 + $0x10] sm:$0xff]  ;;  %v25_v3 = vcvt.s32.f32 %v21_v0  ;;  %v26_v4 = vcvt.s32.f32 %v22_v1  ;;  %v24_v6 = vld [vmem:[#allocation2 + $0x18] sm:$0xff]  ;;  %s40_s19 = int_to_ptr.vmem [resolvable:$true] %s39_s19 }
  0x14   :  { %v27_v5 = vcvt.s32.f32 %v23_v2  ;;  %v28_v7 = vcvt.s32.f32 %v24_v6  ;;  %s72_s20 = scalar_lea.vmem %s40_s19, 512  ;;  %p77_p9 = scmp.lt.s32.totalorder %s40_s19, %s40_s19 }
  0x15   :  { %29 = vst [vmem:[#allocation5] sm:$0xff] %v25_v3  ;;  %30 = vst [vmem:[#allocation5 + $0x8] sm:$0xff] %v26_v4  ;;  %p73_p8 = scmp.ne.s32.totalorder %s40_s19, %s72_s20  ;;  %p78_p10 = scmp.lt.s32.totalorder %s72_s20, %s72_s20 }
  0x16   :  { %31 = vst [vmem:[#allocation5 + $0x10] sm:$0xff] %v27_v5  ;;  %32 = vst [vmem:[#allocation5 + $0x18] sm:$0xff] %v28_v7 }
  0x17   :  { %p79_p11 = por %p78_p10, %p77_p9 }
  0x19   :  { %p80_p12 = pnand %p79_p11, %p73_p8 }
  0x1b   :  { %83 = shalt.err (!%p80_p12)
}
  0x1c   :  { %s84_s22 = scalar_lea.hbm %s135_s1, 512 }
  0x1d   :  { %p85_p13 = scmp.ne.s32.totalorder %s135_s1, %s84_s22  ;;  %p88_p0 = scmp.lt.u32.totalorder %s84_s22, %s135_s1 }
  0x1f   :  { %p90_p1 = pnand %p88_p0, %p85_p13 }
  0x21   :  { %93 = shalt.err (!%p90_p1)
}
  0x22   :  { %42 = dma.vmem_to_hbm [thread:$0]  %s40_s19, 512, %s135_s1, [#allocation4]  }
  0x23   :  { %96 = dma.done.wait [#allocation4], 512  }
  0x24   :  { %97 = vsyncadd [#allocation4], 4294966784 }
  0x25   :  { %46 = vsyncpa [#allocation3], 1 }
  0x26   :  { %47 = vsyncpa [#allocation4], 1 }

</bundles_post_ra>
